<compile_context>
chip_gen: v7x
topology: tpu7x:2x2x1
jax: 0.10.0
libtpu: 0.0.40
codegen_flags: <defaults>
</compile_context>

<pallas_src>
import jax
import jax.numpy as jnp
from jax import lax
from jax.experimental import pallas as pl
from jax.experimental.pallas import tpu as pltpu


def _round_up(x, m):
    return (x + m - 1) // m * m


def _conv_bn_relu_kernel(p_ref, w_ref, b_ref, o_ref):
    # p_ref: (1, Kc_pad, TILE_M)   bf16 im2col patch tile (contraction x spatial)
    # w_ref: (Cout_pad, Kc_pad)    bf16 BN-scale-folded conv weights (grid-constant)
    # b_ref: (Cout_pad, 1)         f32 folded BN bias (beta - mean*scale)
    # o_ref: (1, Cout_pad, TILE_M) lane-dense NCHW-flattened output tile
    acc = jnp.dot(w_ref[...], p_ref[0],
                  preferred_element_type=jnp.float32)       # (Cout_pad, TILE_M)
    o_ref[0] = jnp.maximum(acc + b_ref[...], 0.0).astype(o_ref.dtype)


def conv_bn_relu(x_nchw, w_oihw, gamma, beta, run_mean, run_var,
                 stride=1, padding=1, eps=1e-5):
    N, Cin, H, W = x_nchw.shape
    Cout, _, KH, KW = w_oihw.shape
    H_out = (H + 2 * padding - KH) // stride + 1
    W_out = (W + 2 * padding - KW) // stride + 1
    M = H_out * W_out            # spatial (lane) dim
    Kc = Cin * KH * KW           # contraction dim

    # bf16 operands -> sublane packing of 16 on both Cout and Kc.
    Cout_pad = _round_up(Cout, 16)
    Kc_pad = _round_up(Kc, 16)

    # Adaptive spatial tile: as large as 512, but keep >= 4 parallel grid
    # steps total (>= 2 per TensorCore on v7x megacore).  Never below the
    # 128-lane minimum.
    TILE_M = 512
    while TILE_M > 128 and N * ((M + TILE_M - 1) // TILE_M) < 4:
        TILE_M //= 2
    M_pad = _round_up(M, TILE_M)

    # ---- Fold BN (eval mode) into per-channel weight scale + bias ----------
    scale = gamma / jnp.sqrt(run_var + eps)                  # (Cout,)
    bias = beta - run_mean * scale                           # (Cout,)
    w_folded = w_oihw.astype(jnp.float32) * scale[:, None, None, None]
    # (Cout, Cin, KH, KW) -> (Cout, Kc); contraction index = c*KH*KW + kh*KW + kw
    wmat = w_folded.reshape(Cout, Kc)
    wmat = jnp.pad(wmat, ((0, Cout_pad - Cout), (0, Kc_pad - Kc)))
    wmat = wmat.astype(jnp.bfloat16)
    bvec = jnp.pad(bias.astype(jnp.float32),
                   (0, Cout_pad - Cout)).reshape(Cout_pad, 1)

    # ---- im2col in the wrapper (glue): one lane-dense patch matrix ---------
    # patches[n, c*KH*KW + kh*KW + kw, ho*W_out + wo] = xp[n, c, kh+ho*s, kw+wo*s]
    xp = jnp.pad(x_nchw.astype(jnp.float32),
                 ((0, 0), (0, 0), (padding, padding), (padding, padding)))
    cols = []
    for kh in range(KH):
        for kw in range(KW):
            cols.append(xp[:, :,
                           kh:kh + H_out * stride:stride,
                           kw:kw + W_out * stride:stride])
    patches = jnp.stack(cols, axis=2)                 # (N, Cin, KH*KW, H_out, W_out)
    patches = patches.reshape(N, Kc, M)
    patches = jnp.pad(patches, ((0, 0), (0, Kc_pad - Kc), (0, M_pad - M)))
    patches = patches.astype(jnp.bfloat16)

    grid = (N, M_pad // TILE_M)
    out = pl.pallas_call(
        _conv_bn_relu_kernel,
        out_shape=jax.ShapeDtypeStruct((N, Cout_pad, M_pad), x_nchw.dtype),
        grid_spec=pltpu.PrefetchScalarGridSpec(
            num_scalar_prefetch=0,
            grid=grid,
            in_specs=[
                pl.BlockSpec((1, Kc_pad, TILE_M), lambda n, m: (n, 0, m)),
                pl.BlockSpec((Cout_pad, Kc_pad), lambda n, m: (0, 0)),
                pl.BlockSpec((Cout_pad, 1), lambda n, m: (0, 0)),
            ],
            out_specs=pl.BlockSpec((1, Cout_pad, TILE_M),
                                   lambda n, m: (n, 0, m)),
        ),
        compiler_params=pltpu.CompilerParams(
            dimension_semantics=("parallel", "parallel")),
    )(patches, wmat, bvec)

    # Output is already NCHW-flattened; slice only if padding exists.
    if Cout_pad != Cout:
        out = out[:, :Cout]
    if M_pad != M:
        out = out[..., :M]
    return out.reshape(N, Cout, H_out, W_out)


def _reference(x_nchw, w_oihw, gamma, beta, run_mean, run_var,
               stride=1, padding=1, eps=1e-5):
    y = lax.conv_general_dilated(
        x_nchw, w_oihw,
        window_strides=(stride, stride),
        padding=((padding, padding), (padding, padding)),
        dimension_numbers=("NCHW", "OIHW", "NCHW"))
    scale = (gamma / jnp.sqrt(run_var + eps)).reshape(1, -1, 1, 1)
    bias = (beta - run_mean * gamma / jnp.sqrt(run_var + eps)).reshape(1, -1, 1, 1)
    return jnp.maximum(y * scale + bias, 0.0)


if __name__ == "__main__":
    key = jax.random.PRNGKey(0)
    k_x, k_w, k_g, k_b, k_m, k_v = jax.random.split(key, 6)

    # ConvBnRelu(in_channels=4, out_channels=8, kernel_size=3, stride=1, padding=1)
    N, Cin, H, W = 2, 4, 16, 16
    Cout, KH, KW = 8, 3, 3

    x = jax.random.normal(k_x, (N, Cin, H, W), dtype=jnp.float32)
    w = jax.random.normal(k_w, (Cout, Cin, KH, KW), dtype=jnp.float32) * 0.1
    gamma = 1.0 + 0.1 * jax.random.normal(k_g, (Cout,), dtype=jnp.float32)
    beta = 0.1 * jax.random.normal(k_b, (Cout,), dtype=jnp.float32)
    run_mean = 0.1 * jax.random.normal(k_m, (Cout,), dtype=jnp.float32)
    run_var = jax.random.uniform(k_v, (Cout,), dtype=jnp.float32,
                                 minval=0.5, maxval=1.5)

    out = conv_bn_relu(x, w, gamma, beta, run_mean, run_var,
                       stride=1, padding=1)
    out = jax.block_until_ready(out)

    ref = _reference(x, w, gamma, beta, run_mean, run_var,
                     stride=1, padding=1)
    assert out.shape == (N, Cout, H, W), out.shape
    # bf16 MXU operands (f32 accumulation) -> ~1e-2 tolerance.
    assert jnp.allclose(out, ref, atol=5e-2, rtol=5e-2), float(
        jnp.max(jnp.abs(out - ref)))

    print("KERNEL_OK")
</pallas_src>

<mosaic_0001>
module attributes {stable_mosaic.version = 11 : i64} {
  func.func @_conv_bn_relu_kernel(%arg0: i32, %arg1: i32, %arg2: memref<1x48x128xbf16, #tpu.memory_space<vmem>>, %arg3: memref<16x48xbf16, #tpu.memory_space<vmem>>, %arg4: memref<16x1xf32, #tpu.memory_space<vmem>>, %arg5: memref<1x16x128xf32, #tpu.memory_space<vmem>>) attributes {dimension_semantics = [#tpu.dimension_semantics<parallel>, #tpu.dimension_semantics<parallel>], iteration_bounds = array<i64: 2, 2>, scalar_prefetch = 0 : i64, scratch_operands = 0 : i64, tpu.core_type = #tpu.core_type<tc>, window_params = [{transform_indices = @transform_0, window_bounds = array<i64: 1, 48, 128>}, {pipeline_mode = #tpu.pipeline_mode<synchronous>, transform_indices = @transform_1, window_bounds = array<i64: 16, 48>}, {pipeline_mode = #tpu.pipeline_mode<synchronous>, transform_indices = @transform_2, window_bounds = array<i64: 16, 1>}, {transform_indices = @transform_3, window_bounds = array<i64: 1, 16, 128>}]} {
    %c0 = arith.constant 0 : index
    %c0_0 = arith.constant 0 : index
    %0 = vector.load %arg3[%c0, %c0_0] : memref<16x48xbf16, #tpu.memory_space<vmem>>, vector<16x48xbf16>
    %c0_1 = arith.constant 0 : index
    %c0_2 = arith.constant 0 : index
    %c0_3 = arith.constant 0 : index
    %1 = vector.load %arg2[%c0_1, %c0_2, %c0_3] : memref<1x48x128xbf16, #tpu.memory_space<vmem>>, vector<1x48x128xbf16>
    %2 = vector.shape_cast %1 : vector<1x48x128xbf16> to vector<48x128xbf16>
    %cst = arith.constant dense<0.000000e+00> : vector<16x128xf32>
    %3 = tpu.matmul %0, %2, %cst {dimension_numbers = #tpu.dot_dimension_numbers<[1], [0], [0], [1], [0, 0, 1, 1], [], []>} : vector<16x48xbf16>, vector<48x128xbf16>, vector<16x128xf32> -> vector<16x128xf32>
    %c0_4 = arith.constant 0 : index
    %c0_5 = arith.constant 0 : index
    %4 = vector.load %arg4[%c0_4, %c0_5] : memref<16x1xf32, #tpu.memory_space<vmem>>, vector<16x1xf32>
    %5 = vector.broadcast %4 : vector<16x1xf32> to vector<16x128xf32>
    %6 = arith.addf %3, %5 : vector<16x128xf32>
    %cst_6 = arith.constant 0.000000e+00 : f32
    %7 = vector.broadcast %cst_6 : f32 to vector<16x128xf32>
    %8 = arith.maximumf %6, %7 : vector<16x128xf32>
    %c0_7 = arith.constant 0 : index
    %c0_8 = arith.constant 0 : index
    %c0_9 = arith.constant 0 : index
    %9 = vector.load %arg5[%c0_7, %c0_8, %c0_9] : memref<1x16x128xf32, #tpu.memory_space<vmem>>, vector<1x16x128xf32>
    %10 = vector.shape_cast %9 : vector<1x16x128xf32> to vector<16x128xf32>
    %11 = vector.shape_cast %8 : vector<16x128xf32> to vector<1x16x128xf32>
    tpu.vector_store %arg5[%c0_7, %c0_8, %c0_9], %11 {strides = array<i32>} : memref<1x16x128xf32, #tpu.memory_space<vmem>>, vector<1x16x128xf32>,
    return
  }
  func.func @transform_0(%arg0: i32, %arg1: i32) -> (i32, i32, i32) {
    %c0_i32 = arith.constant 0 : i32
    %c0_i32_0 = arith.constant 0 : i32
    return %arg0, %c0_i32, %arg1 : i32, i32, i32
  }
  func.func @transform_1(%arg0: i32, %arg1: i32) -> (i32, i32) {
    %c0_i32 = arith.constant 0 : i32
    %c0_i32_0 = arith.constant 0 : i32
    %c0_i32_1 = arith.constant 0 : i32
    return %c0_i32, %c0_i32_0 : i32, i32
  }
  func.func @transform_2(%arg0: i32, %arg1: i32) -> (i32, i32) {
    %c0_i32 = arith.constant 0 : i32
    %c0_i32_0 = arith.constant 0 : i32
    %c0_i32_1 = arith.constant 0 : i32
    return %c0_i32, %c0_i32_0 : i32, i32
  }
  func.func @transform_3(%arg0: i32, %arg1: i32) -> (i32, i32, i32) {
    %c0_i32 = arith.constant 0 : i32
    %c0_i32_0 = arith.constant 0 : i32
    return %arg0, %c0_i32, %arg1 : i32, i32, i32
  }
}

</mosaic_0001>

<bundles_post_ra>
// kernel: tpu_custom_call.1
= control target key start
LH: loop header
LB: loop body
LE: loop exit
PB: predicated region body
PF: predicated region fallthrough
CT: control target
= control target key end

     0   :  { %8 = vsyncpa [#allocation3], 0  ;;  %s894_s0 = inlined_call_operand.hbm [shape: bf16[2,48,256], index: 0, kind: input, shape index: {}]   ;;  %s895_s1 = inlined_call_operand.vmem [shape: bf16[16,48], index: 1, kind: input, shape index: {}]   ;;  %s896_s2 = inlined_call_operand.vmem [shape: f32[16,1], index: 2, kind: input, shape index: {}]   ;;  %s897_s3 = inlined_call_operand.hbm [shape: f32[2,16,256], index: 3, kind: output, shape index: {}]  }
   0x1   :  { %10 = vsyncpa [#allocation3 + $0x1], 0 }
   0x2   :  { %11 = vsyncpa [#allocation4], 0 }
   0x3   :  { %13 = vsyncpa [#allocation4 + $0x1], 0  ;;  %s689_s12 = smov 0   ;;  %s691_s13 = smov 0  }
   0x4   :  { %s693_s14 = smov 0   ;;  %s695_s15 = smov 0  }
   0x5   :  { %s697_s16 = smov 0   ;;  %s699_s17 = smov 0  }
   0x6   :  { %s701_s18 = smov 0   ;;  %s703_s19 = smov 0  }
   0x7 LB: > { %s402_s20 = sadd.s32 4294967295, %s656_s19   ;;  %s403_s21 = sadd.s32 4294967294, %s656_s19   ;;  %s656_s19 = sphi %s703_s19, %s19_s19   ;;  %s652_s18 = sphi %s701_s18, %s912_s18   ;;  %s648_s17 = sphi %s699_s17, %s911_s17   ;;  %s644_s16 = sphi %s697_s16, %s910_s16   ;;  %s640_s15 = sphi %s695_s15, %s909_s15   ;;  %s636_s14 = sphi %s693_s14, %s908_s14   ;;  %s632_s13 = sphi %s691_s13, %s907_s13   ;;  %s628_s12 = sphi %s689_s12, %s906_s12  }
   0x8   : > { %s28_s22 = sadd.s32 1, %s648_s17  ;;  %s31_s23 = sadd.s32 1, %s652_s18 }
   0x9   : > { %p29_p0 = scmp.ge.s32.totalorder %s28_s22, 2  ;;  %s40_s24 = sadd.s32 1, %s636_s14 }
   0xa   : > { %p47_p1 = scmp.ne.s32.totalorder %s636_s14, %s632_s13  ;;  %p48_p2 = scmp.eq.s32.totalorder %s656_s19, 0 }
   0xb   : > { %s914_s22 = smov (%p29_p0, %s28_s22), 0  ;;  %s916_s23 = smov (!%p29_p0, %s31_s23), %s652_s18 }
   0xc   : > { %s36_s25 = ssub.s32 %s648_s17, %s914_s22  ;;  %p742_p3 = por %p48_p2, %p47_p1 }
   0xd   : > { %p33_p4 = scmp.ge.s32.totalorder %s916_s23, 2  ;;  %p53_p5 = scmp.ne.s32.totalorder %s632_s13, %s628_s12 }
   0xe   : > { %p54_p6 = scmp.eq.s32.totalorder %s402_s20, 0  ;;  %p121_p7 = scmp.eq.s32.totalorder %s402_s20, 3 }
   0xf   : > { %s918_s23 = smov (%p33_p4, %s916_s23), 0  ;;  %p127_p10 = scmp.eq.s32.totalorder %s403_s21, 3 }
  0x10   : > { %p750_p8 = por %p54_p6, %p53_p5  ;;  %p754_p9 = por %p121_p7, %p47_p1 }
  0x11   : > { %s35_s29 = ssub.s32 %s652_s18, %s918_s23  ;;  %p760_p12 = por %p127_p10, %p53_p5 }
  0x12   : > { %s901_s28 = scalar_select %p754_p9, 1, 0 }
  0x13   : > { %s37_s30 = sor.u32 %s36_s25, %s35_s29  ;;  %p448_p13 = scmp.lt.s32.totalorder %s656_s19, 4 }
  0x14   : > { %p38_p11 = scmp.eq.s32.totalorder %s37_s30, 0  ;;  %s153_s5 = sand.u32 1, %s636_s14  }
  0x15   : > { %s902_s4 = scalar_select %p760_p12, 1, 0 }
  0x16   : > { %s767_s6 = scalar_select %p38_p11, %s636_s14, %s40_s24  }
  0x17   : > { %s433_s7 = smul.u32 24, %s153_s5  ;;  %p772_p0 = pnand %p448_p13, %p742_p3 }
  0x18   : > { %s434_s8 = smul.u32 12, %s652_s18  ;;  %s784_s26 = scalar_lea.sflag [#allocation3], %s153_s5 }
  0x19   : > { %s157_s11 = scalar_lea.vmem [#allocation2], %s433_s7  ;;  %p530_p2 = pneg %p772_p0 }
  0x1a   : > { %s162_s10 = sadd.s32 %s648_s17, %s434_s8  ;;  %s165_s20 = sshll.u32 %s157_s11, 4  ;;  %s777_s20 = int_to_ptr.vmem [resolvable:$true] %s165_s20 }
  0x1b   : > { %s406_s21 = sshll.u32 %s162_s10, 6  ;;  %s533_s10 = scalar_lea.hbm %s894_s0, 1536 }
  0x1c   : > { %s782_s24 = scalar_lea.hbm %s894_s0, %s406_s21 }
  0x1d   : > { %s528_s30 = scalar_lea.hbm %s782_s24, 384  ;;  %p534_p5 = scmp.lt.u32.totalorder %s782_s24, %s894_s0 }
  0x1e   : > { %p529_p1 = scmp.ne.s32.totalorder %s782_s24, %s528_s30  ;;  %p535_p6 = scmp.lt.u32.totalorder %s533_s10, %s528_s30 }
  0x1f   : > { %p537_p10 = scmp.lt.u32.totalorder %s528_s30, %s782_s24 }
  0x20   : > { %p531_p3 = pnand %p530_p2, %p529_p1  ;;  %p536_p7 = por %p535_p6, %p534_p5 }
  0x22   : > { %p532_p4 = pneg %p531_p3  ;;  %p538_p11 = por %p537_p10, %p536_p7 }
  0x24   : > { %p539_p13 = pnand %p538_p11, %p532_p4 }
  0x26   : > { %542 = shalt.err (!%p539_p13)
}
  0x27   : > { %s543_s5 = scalar_lea.vmem %s777_s20, 384  ;;  %s658_s25 = smov [#allocation2]  }
  0x28   : > { %p544_p1 = scmp.ne.s32.totalorder %s777_s20, %s543_s5  ;;  %s548_s29 = sshll.u32 %s658_s25, 4  ;;  %s549_s29 = int_to_ptr.vmem [resolvable:$false] %s548_s29 }
  0x29   : > { %s550_s7 = scalar_lea.vmem %s549_s29, 768  ;;  %p551_p9 = scmp.lt.s32.totalorder %s777_s20, %s549_s29 }
  0x2a   : > { %p546_p3 = pnand %p544_p1, %p530_p2  ;;  %p552_p5 = scmp.lt.s32.totalorder %s550_s7, %s543_s5 }
  0x2c   : > { %p547_p12 = pneg %p546_p3  ;;  %p553_p6 = por %p552_p5, %p551_p9 }
  0x2e   : > { %p554_p7 = pnand %p553_p6, %p547_p12 }
  0x30   : > { %557 = shalt.err (!%p554_p7)
}
  0x31   : > { %s659_s30 = smov 128   ;;  %s660_s8 = smov 64  }
  0x32   : > { %s661_s10 = smov 4   ;;  %p407_p2 = scmp.ge.s32.totalorder %s656_s19, 1 }
  0x33   : > { %443 = dma.hbm_to_vmem [thread:$0]  (!%p772_p0), %s782_s24, 384, %s777_s20, %s784_s26, %s659_s30, %s660_s8, %s661_s10  }
  0x34   : > { %p173_p4 = scmp.lt.s32.totalorder %s656_s19, 5 }
  0x36   : > { %p174_p10 = pnand %p407_p2, %p173_p4 }
  0x37   : > { %s815_s11 = sand.u32 (!%p174_p10), 1, %s632_s13  }
  0x38   : > { %177 = sbr.rel (%p174_p10) target bundleno = 311 (0x137), region = 32  ;;  %s180_s5 = scalar_lea.sflag (!%p174_p10), [#allocation3], %s815_s11 }
  0x39   : > { %s435_s21 = smul.u32 (!%p174_p10), 24, %s815_s11 }
  0x3b   : > { %s183_s25 = scalar_lea.vmem (!%p174_p10), [#allocation2], %s435_s21 }
  0x3f   : > { %619 = dma.done.wait (%p750_p8), %s180_s5, 384  }
  0x40   : > { %621 = vsyncadd (%p750_p8), %s180_s5, 4294966912  ;;  %v662_v0 = vmov 0.0   ;;  %vm663_vm0 = vmmov 0   ;;  %v664_v1 = vmov 0   ;;  %v524_v2 = vld [vmem:[%s183_s25] sm:$0xff]   ;;  %v525_v3 = vld [vmem:[%s183_s25 + $0x8] sm:$0xff]  }
  0x41   : > { %423 = vmatprep.subr.bf16.mxu0 %v662_v0  ;;  %429 = vmatprep.mubr.msk.bf16.mxu0 %vm663_vm0, %v662_v0  ;;  %v215_v4 = vld [vmem:[%s896_s2] sm:$0xff]  ;;  %v526_v5 = vld [vmem:[%s183_s25 + $0x10] sm:$0xff]   ;;  %vm250_vm1 = vcmask 392192   ;;  %s408_s7 = sshll.u32 %s815_s11, 4  ;;  %s415_s30 = sshll.u32 %s644_s16, 2 }
  0x42   : > { %523 = vset.pattern.permute.xlu0 %v664_v1  ;;  %424 = vmatpush3.bf16.msra.mxu0 %v524_v2  ;;  %v216_v6 = vld [vmem:[%s896_s2 + $0x8] sm:$0xff]  ;;  %v527_v7 = vld [vmem:[%s895_s1] sm:$0xff]   ;;  %s311_s8 = sadd.s32 %s640_s15, %s415_s30  ;;  %s205_s10 = scalar_lea.vmem [#allocation5], %s408_s7 }
  0x43   : > { %425 = vmatprep.subr.bf16.mxu0 %v662_v0  ;;  %219 = vperm.xlu0 %523, %v215_v4   ;;  %s314_s21 = sshll.u32 %s205_s10, 4  ;;  %s416_s5 = sshll.u32 %s311_s8, 7  ;;  %s835_s21 = int_to_ptr.vmem [resolvable:$true] %s314_s21 }
  0x44   : > { %s840_s25 = scalar_lea.hbm %s897_s3, %s416_s5  ;;  %s300_s9 = scalar_lea.sflag [#allocation4], %s815_s11 }
  0x45   : > { %s558_s20 = scalar_lea.vmem %s835_s21, 256  ;;  %p904_p9 = scmp.ne.s32.totalorder %s901_s28, 0 }
  0x46   : > { %426 = vmatpush3.bf16.msra.mxu0 %v525_v3  ;;  %p559_p8 = scmp.ne.s32.totalorder %s835_s21, %s558_s20  ;;  %s665_s27 = smov [#allocation5]  }
  0x47   : > { %427 = vmatprep.subr.bf16.mxu0 %v662_v0  ;;  %224 = vperm.xlu0 %523, %v216_v6   ;;  %s562_s24 = sshll.u32 %s665_s27, 4  ;;  %s563_s24 = int_to_ptr.vmem [resolvable:$false] %s562_s24 }
  0x48   : > { %p560_p12 = pnand %p559_p8, %p904_p9  ;;  %s564_s26 = scalar_lea.vmem %s563_s24, 512 }
  0x49   : > { %p565_p11 = scmp.lt.s32.totalorder %s835_s21, %s563_s24  ;;  %p566_p13 = scmp.lt.s32.totalorder %s564_s26, %s558_s20 }
  0x4a   : > { %428 = vmatpush3.bf16.msra.mxu0 %v526_v5  ;;  %p561_p0 = pneg %p560_p12 }
  0x4b   : > { %p567_p1 = por %p566_p13, %p565_p11 }
  0x4d   : > { %430 = vmatmul.mubr.msk.bf16.vlgmr.msra.gmra.mrb[0].mxu0 %vm250_vm1, %v527_v7  ;;  %p568_p3 = pnand %p567_p1, %p561_p0 }
  0xc2   : > { %v220_v8 = vpop.permute.xlu0 %219 }
  0xc6   : > { %v225_v12 = vpop.permute.xlu0 %224 }
 0x120   : > { %v288_v9 = vpop.f32.mrb[0].mxu0 }
 0x121   : > { %v289_v10 = vadd.f32 %v288_v9, %v220_v8  ;;  %v431_v11 = vpop.f32.mrb[1].mxu0 }
 0x122   : > { %v291_v13 = vpop.f32.mrb[2].mxu0 }
 0x123   : > { %v295_v14 = vmax.f32 %v289_v10, 0.0  ;;  %v292_v15 = vadd.f32 %v291_v13, %v225_v12  ;;  %v432_v16 = vpop.f32.mrb[3].mxu0 }
 0x125   : > { %297 = vst [vmem:[%s205_s10] sm:$0xff] %v295_v14  ;;  %v296_v17 = vmax.f32 %v292_v15, 0.0 }
 0x127   : > { %298 = vst [vmem:[%s205_s10 + $0x8] sm:$0xff] %v296_v17 }
 0x128   : > { %571 = shalt.err (!%p568_p3)
}
 0x129   : > { %s572_s29 = scalar_lea.hbm %s840_s25, 256  ;;  %s576_s8 = scalar_lea.hbm %s897_s3, 1024 }
 0x12a   : > { %p573_p5 = scmp.ne.s32.totalorder %s840_s25, %s572_s29  ;;  %p577_p2 = scmp.lt.u32.totalorder %s840_s25, %s897_s3 }
 0x12b   : > { %p578_p4 = scmp.lt.u32.totalorder %s576_s8, %s572_s29  ;;  %p580_p8 = scmp.lt.u32.totalorder %s572_s29, %s840_s25 }
 0x12c   : > { %p574_p6 = pnand %p573_p5, %p904_p9 }
 0x12d   : > { %p579_p10 = por %p578_p4, %p577_p2 }
 0x12e   : > { %p575_p7 = pneg %p574_p6 }
 0x12f   : > { %p581_p12 = por %p580_p8, %p579_p10 }
 0x131   : > { %p582_p0 = pnand %p581_p12, %p575_p7 }
 0x133   : > { %585 = shalt.err (!%p582_p0)
}
 0x134   : > { %s666_s16 = smov 128   ;;  %s667_s15 = smov 256  }
 0x135   : > { %s668_s20 = smov 8  }
 0x136   : > { %438 = dma.vmem_to_hbm [thread:$0]  (%p904_p9), %s835_s21, 256, %s840_s25, %s300_s9, %s666_s16, %s667_s15, %s668_s20  }
 0x137 PF: > { %p449_p11 = scmp.ge.s32.totalorder %s656_s19, 2  ;;  %s329_s27 = sand.u32 1, %s628_s12  }
 0x138   : > { %p905_p13 = scmp.ne.s32.totalorder %s902_s4, 0  ;;  %s330_s24 = scalar_lea.sflag [#allocation4], %s329_s27 }
 0x13a   : > { %p445_p1 = pnand %p449_p11, %p905_p13 }
 0x13c   : > { %623 = dma.done.wait (!%p445_p1), %s330_s24, 256  }
 0x13d   : > { %625 = vsyncadd (!%p445_p1), %s330_s24, 4294967040  ;;  %s19_s19 = sadd.s32 1, %s656_s19   ;;  %s906_s12 = smov %s632_s13 }
 0x13e   : > { %p16_p3 = scmp.ge.s32.totalorder %s19_s19, 6   ;;  %s907_s13 = smov %s636_s14 }
 0x13f   : > { %s908_s14 = smov %s767_s6  ;;  %s909_s15 = smov %s648_s17 }
 0x140   : > { %s910_s16 = smov %s652_s18  ;;  %s911_s17 = smov %s914_s22 }
 0x141   : > { %s912_s18 = smov %s918_s23  ;;  %18 = sbr.rel (!%p16_p3) target bundleno = 7 (0x7), region = 77 }
 0x148   :  { %335 = vsyncpa [#allocation3], 1 }
 0x149   :  { %337 = vsyncpa [#allocation3 + $0x1], 1 }
 0x14a   :  { %338 = vsyncpa [#allocation4], 1 }
 0x14b   :  { %340 = vsyncpa [#allocation4 + $0x1], 1 }

</bundles_post_ra>
